<compile_context>
chip_gen: v7x
topology: tpu7x:2x2x1
jax: 0.10.0
libtpu: 0.0.40
codegen_flags: <defaults>
</compile_context>

<pallas_src>
import numpy as np
import jax
import jax.numpy as jnp
from jax.experimental import pallas as pl
from jax.experimental.pallas import tpu as pltpu


# ---------------------------------------------------------------------------
# Kernel
# ---------------------------------------------------------------------------
def make_kernel(H, W, Cin, Cout):
    WCO = W * Cout

    def kernel(x_ref, w1_ref, s1_ref, b1_ref, w2_ref, s2_ref, b2_ref,
               ws_ref, ss_ref, bs_ref, out_ref, o1p_ref):
        # ---- conv1 (single MXU matmul) + bn1 + relu ----------------------
        # x_ref: (1, H+2, W*Cin) bf16, rows 0 and H+1 are zero padding.
        x1 = jnp.concatenate([x_ref[0, dy:dy + H, :] for dy in range(3)],
                             axis=-1)                                  # (H, 3*W*Cin) bf16
        o1 = jnp.dot(x1, w1_ref[...], preferred_element_type=jnp.float32)
        o1 = jnp.maximum(o1 * s1_ref[...] + b1_ref[...], 0.0)          # (H, W*Cout) f32

        # ---- re-embed into row-padded scratch for conv2 -------------------
        # Only the 2 border rows need zeroing; the interior [1, H+1) is fully
        # overwritten every grid step (safe under "parallel" batch sharding).
        zrow = jnp.zeros((1, WCO), jnp.bfloat16)
        o1p_ref[0:1, :] = zrow
        o1p_ref[H + 1:H + 2, :] = zrow
        o1p_ref[1:H + 1, :] = o1.astype(jnp.bfloat16)

        # ---- conv2 (single MXU matmul) + bn2 ------------------------------
        x2 = jnp.concatenate([o1p_ref[dy:dy + H, :] for dy in range(3)],
                             axis=-1)                                  # (H, 3*W*Cout) bf16
        o2 = jnp.dot(x2, w2_ref[...], preferred_element_type=jnp.float32)
        o2 = o2 * s2_ref[...] + b2_ref[...]

        # ---- shortcut: 1x1 conv (block-diagonal matmul) + bn --------------
        sc = jnp.dot(x_ref[0, 1:H + 1, :], ws_ref[...],
                     preferred_element_type=jnp.float32)
        sc = sc * ss_ref[...] + bs_ref[...]

        # ---- residual add + relu; lane-dense (H, W*Cout) store ------------
        out_ref[0] = jnp.maximum(o2 + sc, 0.0)

    return kernel


# ---------------------------------------------------------------------------
# Host-side weight expansion (one-time parameter preprocessing)
# ---------------------------------------------------------------------------
def expand_conv3x3(w, W):
    """(3,3,Cin,Cout) conv kernel -> (3*W*Cin, W*Cout) block-banded matmul weight.

    Row = dy*W*Cin + jj*Cin + ci, col = j*Cout + c; entry = w[dy, jj-j+1, ci, c]
    when jj-j+1 in {0,1,2}, else 0.  Missing entries at the image borders realize
    the width-direction zero padding of a stride-1 'SAME' conv.
    """
    _, _, Cin, Cout = w.shape
    dx = jnp.arange(3)[:, None, None]
    jj = jnp.arange(W)[None, :, None]
    j = jnp.arange(W)[None, None, :]
    sel = (jj == j + dx - 1).astype(w.dtype)                 # (3, W, W)
    wb = jnp.einsum("xuj,dxio->duijo", sel, w)               # (3, W, Cin, W, Cout)
    return wb.reshape(3 * W * Cin, W * Cout)


def expand_conv1x1(ws, W):
    """(Cin,Cout) 1x1 conv -> (W*Cin, W*Cout) block-diagonal matmul weight."""
    Cin, Cout = ws.shape
    wb = jnp.einsum("uj,io->uijo", jnp.eye(W, dtype=ws.dtype), ws)
    return wb.reshape(W * Cin, W * Cout)


# ---------------------------------------------------------------------------
# Wrapper
# ---------------------------------------------------------------------------
def cbasic_block(x_nchw, params):
    N, Cin, H, W = x_nchw.shape
    Cout = params["w1"].shape[-1]
    WCI, WCO = W * Cin, W * Cout

    # NCHW -> (N, H+2, W*Cin) bf16 with one zero row above/below (dy taps).
    # Width-direction padding lives inside the expanded block weights.
    x = jnp.transpose(x_nchw, (0, 2, 3, 1)).reshape(N, H, WCI)
    x = jnp.pad(x, ((0, 0), (1, 1), (0, 0))).astype(jnp.bfloat16)

    w1b = expand_conv3x3(params["w1"], W).astype(jnp.bfloat16)
    w2b = expand_conv3x3(params["w2"], W).astype(jnp.bfloat16)
    wsb = expand_conv1x1(params["ws"], W).astype(jnp.bfloat16)
    tile = lambda v: jnp.tile(v.astype(jnp.float32), (1, W))   # (1,Cout) -> (1,W*Cout)

    rep = lambda n: (0, 0)   # weights/scales: same block each step -> no re-DMA

    out = pl.pallas_call(
        make_kernel(H, W, Cin, Cout),
        out_shape=jax.ShapeDtypeStruct((N, H, WCO), jnp.float32),
        grid_spec=pltpu.PrefetchScalarGridSpec(
            num_scalar_prefetch=0,
            grid=(N,),
            in_specs=[
                pl.BlockSpec((1, H + 2, WCI), lambda n: (n, 0, 0)),
                pl.BlockSpec((3 * WCI, WCO), rep),
                pl.BlockSpec((1, WCO), rep),
                pl.BlockSpec((1, WCO), rep),
                pl.BlockSpec((3 * WCO, WCO), rep),
                pl.BlockSpec((1, WCO), rep),
                pl.BlockSpec((1, WCO), rep),
                pl.BlockSpec((WCI, WCO), rep),
                pl.BlockSpec((1, WCO), rep),
                pl.BlockSpec((1, WCO), rep),
            ],
            out_specs=pl.BlockSpec((1, H, WCO), lambda n: (n, 0, 0)),
            scratch_shapes=[pltpu.VMEM((H + 2, WCO), jnp.bfloat16)],
        ),
        # Batch items are independent: parallel lets v7x shard across its 2 TCs.
        compiler_params=pltpu.CompilerParams(dimension_semantics=("parallel",)),
    )(x, w1b, tile(params["s1"]), tile(params["b1"]),
      w2b, tile(params["s2"]), tile(params["b2"]),
      wsb, tile(params["ss"]), tile(params["bs"]))

    # (N, H, W*Cout) -> NCHW (trivial reshape + transpose; nothing to crop).
    return jnp.transpose(out.reshape(N, H, W, Cout), (0, 3, 1, 2))


# ---------------------------------------------------------------------------
# Deterministic parameters + pure-JAX reference
# ---------------------------------------------------------------------------
def make_params(key, cin, cout):
    ks = jax.random.split(key, 15)

    def bn_fold(kg, kb, km, kv, c):
        gamma = 1.0 + 0.1 * jax.random.normal(kg, (c,), jnp.float32)
        beta = 0.1 * jax.random.normal(kb, (c,), jnp.float32)
        mean = 0.1 * jax.random.normal(km, (c,), jnp.float32)
        var = jnp.abs(jax.random.normal(kv, (c,), jnp.float32)) + 0.5
        scale = gamma * jax.lax.rsqrt(var + 1e-5)
        bias = beta - mean * scale
        return scale.reshape(1, c), bias.reshape(1, c)

    s1, b1 = bn_fold(ks[0], ks[1], ks[2], ks[3], cout)
    s2, b2 = bn_fold(ks[4], ks[5], ks[6], ks[7], cout)
    ss, bs = bn_fold(ks[8], ks[9], ks[10], ks[11], cout)
    return {
        "w1": 0.2 * jax.random.normal(ks[12], (3, 3, cin, cout), jnp.float32),
        "s1": s1, "b1": b1,
        "w2": 0.2 * jax.random.normal(ks[13], (3, 3, cout, cout), jnp.float32),
        "s2": s2, "b2": b2,
        "ws": 0.2 * jax.random.normal(ks[14], (cin, cout), jnp.float32),
        "ss": ss, "bs": bs,
    }


def ref_block(x_nchw, p):
    """Pure-JAX reference (XLA conv, f32 accumulation) of the same eval-mode block.

    x and the conv weights are rounded to bf16 to match the kernel's MXU operand
    precision (the kernel additionally keeps the conv1->conv2 intermediate in bf16,
    hence the slightly relaxed atol in the check below).
    """
    r = lambda a: a.astype(jnp.bfloat16).astype(jnp.float32)
    x = jnp.transpose(r(x_nchw), (0, 2, 3, 1))

    def conv(a, w):
        return jax.lax.conv_general_dilated(
            a, r(w), (1, 1), "SAME", dimension_numbers=("NHWC", "HWIO", "NHWC"))

    o = jnp.maximum(conv(x, p["w1"]) * p["s1"] + p["b1"], 0.0)
    o = conv(o, p["w2"]) * p["s2"] + p["b2"]
    sc = conv(x, p["ws"][None, None]) * p["ss"] + p["bs"]
    return jnp.transpose(jnp.maximum(o + sc, 0.0), (0, 3, 1, 2))


if __name__ == "__main__":
    N, Cin, H, W = 2, 4, 16, 16
    Cout = 8                                  # in_planes != planes -> projection shortcut

    key = jax.random.PRNGKey(0)
    kx, kp = jax.random.split(key)
    x = jax.random.normal(kx, (N, Cin, H, W), jnp.float32)
    params = make_params(kp, Cin, Cout)

    y = cbasic_block(x, params)
    jax.block_until_ready(y)

    y_ref = ref_block(x, params)
    assert y.shape == (N, Cout, H, W), y.shape
    np.testing.assert_allclose(np.asarray(y), np.asarray(y_ref), rtol=1e-2, atol=2e-2)
    print("KERNEL_OK")
</pallas_src>

<mosaic_0001>
module attributes {stable_mosaic.version = 11 : i64} {
  func.func @kernel(%arg0: i32, %arg1: memref<1x18x64xbf16, #tpu.memory_space<vmem>>, %arg2: memref<192x128xbf16, #tpu.memory_space<vmem>>, %arg3: memref<1x128xf32, #tpu.memory_space<vmem>>, %arg4: memref<1x128xf32, #tpu.memory_space<vmem>>, %arg5: memref<384x128xbf16, #tpu.memory_space<vmem>>, %arg6: memref<1x128xf32, #tpu.memory_space<vmem>>, %arg7: memref<1x128xf32, #tpu.memory_space<vmem>>, %arg8: memref<64x128xbf16, #tpu.memory_space<vmem>>, %arg9: memref<1x128xf32, #tpu.memory_space<vmem>>, %arg10: memref<1x128xf32, #tpu.memory_space<vmem>>, %arg11: memref<1x16x128xf32, #tpu.memory_space<vmem>>, %arg12: memref<18x128xbf16, #tpu.memory_space<vmem>>) attributes {dimension_semantics = [#tpu.dimension_semantics<parallel>], iteration_bounds = array<i64: 2>, scalar_prefetch = 0 : i64, scratch_operands = 1 : i64, tpu.core_type = #tpu.core_type<tc>, window_params = [{transform_indices = @transform_0, window_bounds = array<i64: 1, 18, 64>}, {pipeline_mode = #tpu.pipeline_mode<synchronous>, transform_indices = @transform_1, window_bounds = array<i64: 192, 128>}, {pipeline_mode = #tpu.pipeline_mode<synchronous>, transform_indices = @transform_2, window_bounds = array<i64: 1, 128>}, {pipeline_mode = #tpu.pipeline_mode<synchronous>, transform_indices = @transform_3, window_bounds = array<i64: 1, 128>}, {pipeline_mode = #tpu.pipeline_mode<synchronous>, transform_indices = @transform_4, window_bounds = array<i64: 384, 128>}, {pipeline_mode = #tpu.pipeline_mode<synchronous>, transform_indices = @transform_5, window_bounds = array<i64: 1, 128>}, {pipeline_mode = #tpu.pipeline_mode<synchronous>, transform_indices = @transform_6, window_bounds = array<i64: 1, 128>}, {pipeline_mode = #tpu.pipeline_mode<synchronous>, transform_indices = @transform_7, window_bounds = array<i64: 64, 128>}, {pipeline_mode = #tpu.pipeline_mode<synchronous>, transform_indices = @transform_8, window_bounds = array<i64: 1, 128>}, {pipeline_mode = #tpu.pipeline_mode<synchronous>, transform_indices = @transform_9, window_bounds = array<i64: 1, 128>}, {transform_indices = @transform_10, window_bounds = array<i64: 1, 16, 128>}]} {
    %c0 = arith.constant 0 : index
    %c0_0 = arith.constant 0 : index
    %c0_1 = arith.constant 0 : index
    %0 = vector.load %arg1[%c0, %c0_0, %c0_1] : memref<1x18x64xbf16, #tpu.memory_space<vmem>>, vector<1x16x64xbf16>
    %1 = vector.shape_cast %0 : vector<1x16x64xbf16> to vector<16x64xbf16>
    %c0_2 = arith.constant 0 : index
    %c1 = arith.constant 1 : index
    %c0_3 = arith.constant 0 : index
    %2 = vector.load %arg1[%c0_2, %c1, %c0_3] : memref<1x18x64xbf16, #tpu.memory_space<vmem>>, vector<1x16x64xbf16>
    %3 = vector.shape_cast %2 : vector<1x16x64xbf16> to vector<16x64xbf16>
    %c0_4 = arith.constant 0 : index
    %c2 = arith.constant 2 : index
    %c0_5 = arith.constant 0 : index
    %4 = vector.load %arg1[%c0_4, %c2, %c0_5] : memref<1x18x64xbf16, #tpu.memory_space<vmem>>, vector<1x16x64xbf16>
    %5 = vector.shape_cast %4 : vector<1x16x64xbf16> to vector<16x64xbf16>
    %6 = tpu.concatenate %1, %3, %5 in 1 : vector<16x64xbf16>, vector<16x64xbf16>, vector<16x64xbf16> -> vector<16x192xbf16>
    %c0_6 = arith.constant 0 : index
    %c0_7 = arith.constant 0 : index
    %7 = vector.load %arg2[%c0_6, %c0_7] : memref<192x128xbf16, #tpu.memory_space<vmem>>, vector<192x128xbf16>
    %cst = arith.constant dense<0.000000e+00> : vector<16x128xf32>
    %8 = tpu.matmul %6, %7, %cst {dimension_numbers = #tpu.dot_dimension_numbers<[1], [0], [0], [1], [0, 0, 1, 1], [], []>} : vector<16x192xbf16>, vector<192x128xbf16>, vector<16x128xf32> -> vector<16x128xf32>
    %c0_8 = arith.constant 0 : index
    %c0_9 = arith.constant 0 : index
    %9 = vector.load %arg3[%c0_8, %c0_9] : memref<1x128xf32, #tpu.memory_space<vmem>>, vector<1x128xf32>
    %10 = vector.broadcast %9 : vector<1x128xf32> to vector<16x128xf32>
    %11 = arith.mulf %8, %10 : vector<16x128xf32>
    %c0_10 = arith.constant 0 : index
    %c0_11 = arith.constant 0 : index
    %12 = vector.load %arg4[%c0_10, %c0_11] : memref<1x128xf32, #tpu.memory_space<vmem>>, vector<1x128xf32>
    %13 = vector.broadcast %12 : vector<1x128xf32> to vector<16x128xf32>
    %14 = arith.addf %11, %13 : vector<16x128xf32>
    %cst_12 = arith.constant 0.000000e+00 : f32
    %15 = vector.broadcast %cst_12 : f32 to vector<16x128xf32>
    %16 = arith.maximumf %14, %15 : vector<16x128xf32>
    %cst_13 = arith.constant 0.000000e+00 : bf16
    %17 = vector.broadcast %cst_13 : bf16 to vector<1x128xbf16>
    %c0_14 = arith.constant 0 : index
    %c0_15 = arith.constant 0 : index
    %18 = vector.load %arg12[%c0_14, %c0_15] : memref<18x128xbf16, #tpu.memory_space<vmem>>, vector<1x128xbf16>
    tpu.vector_store %arg12[%c0_14, %c0_15], %17 {strides = array<i32>} : memref<18x128xbf16, #tpu.memory_space<vmem>>, vector<1x128xbf16>,
    %c17 = arith.constant 17 : index
    %c0_16 = arith.constant 0 : index
    %19 = vector.load %arg12[%c17, %c0_16] : memref<18x128xbf16, #tpu.memory_space<vmem>>, vector<1x128xbf16>
    tpu.vector_store %arg12[%c17, %c0_16], %17 {strides = array<i32>} : memref<18x128xbf16, #tpu.memory_space<vmem>>, vector<1x128xbf16>,
    %20 = arith.truncf %16 : vector<16x128xf32> to vector<16x128xbf16>
    %c1_17 = arith.constant 1 : index
    %c0_18 = arith.constant 0 : index
    %21 = vector.load %arg12[%c1_17, %c0_18] : memref<18x128xbf16, #tpu.memory_space<vmem>>, vector<16x128xbf16>
    tpu.vector_store %arg12[%c1_17, %c0_18], %20 {strides = array<i32>} : memref<18x128xbf16, #tpu.memory_space<vmem>>, vector<16x128xbf16>,
    %c0_19 = arith.constant 0 : index
    %c0_20 = arith.constant 0 : index
    %22 = vector.load %arg12[%c0_19, %c0_20] : memref<18x128xbf16, #tpu.memory_space<vmem>>, vector<16x128xbf16>
    %c1_21 = arith.constant 1 : index
    %c0_22 = arith.constant 0 : index
    %23 = vector.load %arg12[%c1_21, %c0_22] : memref<18x128xbf16, #tpu.memory_space<vmem>>, vector<16x128xbf16>
    %c2_23 = arith.constant 2 : index
    %c0_24 = arith.constant 0 : index
    %24 = vector.load %arg12[%c2_23, %c0_24] : memref<18x128xbf16, #tpu.memory_space<vmem>>, vector<16x128xbf16>
    %25 = tpu.concatenate %22, %23, %24 in 1 : vector<16x128xbf16>, vector<16x128xbf16>, vector<16x128xbf16> -> vector<16x384xbf16>
    %c0_25 = arith.constant 0 : index
    %c0_26 = arith.constant 0 : index
    %26 = vector.load %arg5[%c0_25, %c0_26] : memref<384x128xbf16, #tpu.memory_space<vmem>>, vector<384x128xbf16>
    %cst_27 = arith.constant dense<0.000000e+00> : vector<16x128xf32>
    %27 = tpu.matmul %25, %26, %cst_27 {dimension_numbers = #tpu.dot_dimension_numbers<[1], [0], [0], [1], [0, 0, 1, 1], [], []>} : vector<16x384xbf16>, vector<384x128xbf16>, vector<16x128xf32> -> vector<16x128xf32>
    %c0_28 = arith.constant 0 : index
    %c0_29 = arith.constant 0 : index
    %28 = vector.load %arg6[%c0_28, %c0_29] : memref<1x128xf32, #tpu.memory_space<vmem>>, vector<1x128xf32>
    %29 = vector.broadcast %28 : vector<1x128xf32> to vector<16x128xf32>
    %30 = arith.mulf %27, %29 : vector<16x128xf32>
    %c0_30 = arith.constant 0 : index
    %c0_31 = arith.constant 0 : index
    %31 = vector.load %arg7[%c0_30, %c0_31] : memref<1x128xf32, #tpu.memory_space<vmem>>, vector<1x128xf32>
    %32 = vector.broadcast %31 : vector<1x128xf32> to vector<16x128xf32>
    %33 = arith.addf %30, %32 : vector<16x128xf32>
    %c0_32 = arith.constant 0 : index
    %c1_33 = arith.constant 1 : index
    %c0_34 = arith.constant 0 : index
    %34 = vector.load %arg1[%c0_32, %c1_33, %c0_34] : memref<1x18x64xbf16, #tpu.memory_space<vmem>>, vector<1x16x64xbf16>
    %35 = vector.shape_cast %34 : vector<1x16x64xbf16> to vector<16x64xbf16>
    %c0_35 = arith.constant 0 : index
    %c0_36 = arith.constant 0 : index
    %36 = vector.load %arg8[%c0_35, %c0_36] : memref<64x128xbf16, #tpu.memory_space<vmem>>, vector<64x128xbf16>
    %cst_37 = arith.constant dense<0.000000e+00> : vector<16x128xf32>
    %37 = tpu.matmul %35, %36, %cst_37 {dimension_numbers = #tpu.dot_dimension_numbers<[1], [0], [0], [1], [0, 0, 1, 1], [], []>} : vector<16x64xbf16>, vector<64x128xbf16>, vector<16x128xf32> -> vector<16x128xf32>
    %c0_38 = arith.constant 0 : index
    %c0_39 = arith.constant 0 : index
    %38 = vector.load %arg9[%c0_38, %c0_39] : memref<1x128xf32, #tpu.memory_space<vmem>>, vector<1x128xf32>
    %39 = vector.broadcast %38 : vector<1x128xf32> to vector<16x128xf32>
    %40 = arith.mulf %37, %39 : vector<16x128xf32>
    %c0_40 = arith.constant 0 : index
    %c0_41 = arith.constant 0 : index
    %41 = vector.load %arg10[%c0_40, %c0_41] : memref<1x128xf32, #tpu.memory_space<vmem>>, vector<1x128xf32>
    %42 = vector.broadcast %41 : vector<1x128xf32> to vector<16x128xf32>
    %43 = arith.addf %40, %42 : vector<16x128xf32>
    %44 = arith.addf %33, %43 : vector<16x128xf32>
    %cst_42 = arith.constant 0.000000e+00 : f32
    %45 = vector.broadcast %cst_42 : f32 to vector<16x128xf32>
    %46 = arith.maximumf %44, %45 : vector<16x128xf32>
    %c0_43 = arith.constant 0 : index
    %c0_44 = arith.constant 0 : index
    %c0_45 = arith.constant 0 : index
    %47 = vector.load %arg11[%c0_43, %c0_44, %c0_45] : memref<1x16x128xf32, #tpu.memory_space<vmem>>, vector<1x16x128xf32>
    %48 = vector.shape_cast %47 : vector<1x16x128xf32> to vector<16x128xf32>
    %49 = vector.shape_cast %46 : vector<16x128xf32> to vector<1x16x128xf32>
    tpu.vector_store %arg11[%c0_43, %c0_44, %c0_45], %49 {strides = array<i32>} : memref<1x16x128xf32, #tpu.memory_space<vmem>>, vector<1x16x128xf32>,
    return
  }
  func.func @transform_0(%arg0: i32) -> (i32, i32, i32) {
    %c0_i32 = arith.constant 0 : i32
    %c0_i32_0 = arith.constant 0 : i32
    %c0_i32_1 = arith.constant 0 : i32
    return %arg0, %c0_i32, %c0_i32_0 : i32, i32, i32
  }
  func.func @transform_1(%arg0: i32) -> (i32, i32) {
    %c0_i32 = arith.constant 0 : i32
    %c0_i32_0 = arith.constant 0 : i32
    %c0_i32_1 = arith.constant 0 : i32
    return %c0_i32, %c0_i32_0 : i32, i32
  }
  func.func @transform_2(%arg0: i32) -> (i32, i32) {
    %c0_i32 = arith.constant 0 : i32
    %c0_i32_0 = arith.constant 0 : i32
    %c0_i32_1 = arith.constant 0 : i32
    return %c0_i32, %c0_i32_0 : i32, i32
  }
  func.func @transform_3(%arg0: i32) -> (i32, i32) {
    %c0_i32 = arith.constant 0 : i32
    %c0_i32_0 = arith.constant 0 : i32
    %c0_i32_1 = arith.constant 0 : i32
    return %c0_i32, %c0_i32_0 : i32, i32
  }
  func.func @transform_4(%arg0: i32) -> (i32, i32) {
    %c0_i32 = arith.constant 0 : i32
    %c0_i32_0 = arith.constant 0 : i32
    %c0_i32_1 = arith.constant 0 : i32
    return %c0_i32, %c0_i32_0 : i32, i32
  }
  func.func @transform_5(%arg0: i32) -> (i32, i32) {
    %c0_i32 = arith.constant 0 : i32
    %c0_i32_0 = arith.constant 0 : i32
    %c0_i32_1 = arith.constant 0 : i32
    return %c0_i32, %c0_i32_0 : i32, i32
  }
  func.func @transform_6(%arg0: i32) -> (i32, i32) {
    %c0_i32 = arith.constant 0 : i32
    %c0_i32_0 = arith.constant 0 : i32
    %c0_i32_1 = arith.constant 0 : i32
    return %c0_i32, %c0_i32_0 : i32, i32
  }
  func.func @transform_7(%arg0: i32) -> (i32, i32) {
    %c0_i32 = arith.constant 0 : i32
    %c0_i32_0 = arith.constant 0 : i32
    %c0_i32_1 = arith.constant 0 : i32
    return %c0_i32, %c0_i32_0 : i32, i32
  }
  func.func @transform_8(%arg0: i32) -> (i32, i32) {
    %c0_i32 = arith.constant 0 : i32
    %c0_i32_0 = arith.constant 0 : i32
    %c0_i32_1 = arith.constant 0 : i32
    return %c0_i32, %c0_i32_0 : i32, i32
  }
  func.func @transform_9(%arg0: i32) -> (i32, i32) {
    %c0_i32 = arith.constant 0 : i32
    %c0_i32_0 = arith.constant 0 : i32
    %c0_i32_1 = arith.constant 0 : i32
    return %c0_i32, %c0_i32_0 : i32, i32
  }
  func.func @transform_10(%arg0: i32) -> (i32, i32, i32) {
    %c0_i32 = arith.constant 0 : i32
    %c0_i32_0 = arith.constant 0 : i32
    %c0_i32_1 = arith.constant 0 : i32
    return %arg0, %c0_i32, %c0_i32_0 : i32, i32, i32
  }
}

</mosaic_0001>

<bundles_post_ra>
// kernel: tpu_custom_call.1
= control target key start
LH: loop header
LB: loop body
LE: loop exit
PB: predicated region body
PF: predicated region fallthrough
CT: control target
= control target key end

     0   :  { %15 = vsyncpa [#allocation4], 0  ;;  %s1889_s0 = inlined_call_operand.vmem [shape: bf16[2,18,64], index: 0, kind: input, shape index: {}]   ;;  %s1890_s1 = inlined_call_operand.hbm [shape: bf16[192,128], index: 1, kind: input, shape index: {}]   ;;  %s1891_s2 = inlined_call_operand.vmem [shape: f32[1,128], index: 2, kind: input, shape index: {}]   ;;  %s1892_s3 = inlined_call_operand.vmem [shape: f32[1,128], index: 3, kind: input, shape index: {}]   ;;  %s1893_s4 = inlined_call_operand.hbm [shape: bf16[384,128], index: 4, kind: input, shape index: {}]   ;;  %s1894_s5 = inlined_call_operand.vmem [shape: f32[1,128], index: 5, kind: input, shape index: {}]   ;;  %s1895_s6 = inlined_call_operand.vmem [shape: f32[1,128], index: 6, kind: input, shape index: {}]   ;;  %s1896_s7 = inlined_call_operand.vmem [shape: bf16[64,128], index: 7, kind: input, shape index: {}]   ;;  %s1897_s8 = inlined_call_operand.vmem [shape: f32[1,128], index: 8, kind: input, shape index: {}]   ;;  %s1898_s9 = inlined_call_operand.vmem [shape: f32[1,128], index: 9, kind: input, shape index: {}]   ;;  %s1899_s10 = inlined_call_operand.hbm [shape: f32[2,16,128], index: 10, kind: output, shape index: {}]  }
   0x1   :  { %16 = vsyncpa [#allocation7], 0 }
   0x2   :  { %17 = vsyncpa [#allocation5], 0 }
   0x3   :  { %19 = vsyncpa [#allocation5 + $0x1], 0  ;;  %s1636_s13 = smov 0   ;;  %s1638_s14 = smov 0  }
   0x4   :  { %s1640_s15 = smov 0   ;;  %s1642_s16 = smov 0  }
   0x5 LB: > { %1907 = sst [smem:[#allocation12_spill]] %s1564_s15  ;;  %s1657_s17 = sadd.s32 4294967295, %s1568_s16   ;;  %s1568_s16 = sphi %s1642_s16, %s1925_s16   ;;  %s1564_s15 = sphi %s1640_s15, %s1927_s15   ;;  %s1560_s14 = sphi %s1638_s14, %s1929_s14   ;;  %s1556_s13 = sphi %s1636_s13, %s1928_s13  }
   0x6   : > { %s1181_s18 = sadd.s32 4294967294, %s1568_s16   ;;  %s1661_s19 = sadd.s32 1, %s1568_s16  }
   0x7   : > { %1908 = sst [smem:[#allocation13_spill]] %s1661_s19  ;;  %s247_s20 = sadd.s32 1, %s1564_s15 }
   0x8   : > { %s244_s21 = ssub.s32 %s1568_s16, %s1661_s19  ;;  %p257_p0 = scmp.ne.s32.totalorder %s1564_s15, %s1560_s14 }
   0x9   : > { %p245_p1 = scmp.eq.s32.totalorder %s244_s21, 0  ;;  %p258_p2 = scmp.eq.s32.totalorder %s1657_s17, 1 }
   0xa   : > { %p263_p3 = scmp.ne.s32.totalorder %s1560_s14, %s1556_s13  ;;  %p264_p4 = scmp.eq.s32.totalorder %s1181_s18, 1 }
   0xb   : > { %s1672_s22 = scalar_select %p245_p1, %s1564_s15, %s247_s20  }
   0xc   : > { %p1674_p5 = por %p258_p2, %p257_p0  ;;  %p1678_p6 = por %p264_p4, %p263_p3 }
   0xd   : > { %1909 = sst [smem:[#allocation14_spill]] %s1672_s22  ;;  %p1182_p7 = scmp.ge.s32.totalorder %s1568_s16, 1 }
   0xe   : > { %s1910_s23 = scalar_select %p1674_p5, 1, 0 }
   0xf   : > { %s1911_s24 = scalar_select %p1678_p6, 1, 0 }
  0x10   : > { %p271_p8 = scmp.lt.s32.totalorder %s1568_s16, 3  ;;  %p1900_p9 = scmp.eq.s32.totalorder %s1657_s17, 0 }
  0x11   : > { %1912 = sst [smem:[#allocation15_spill]] %s1911_s24  ;;  %s1570_s26 = smov [#allocation3]  }
  0x12   : > { %p1685_p10 = pnand %p1182_p7, %p271_p8  ;;  %s283_s27 = sshll.u32 %s1570_s26, 4  ;;  %s284_s27 = int_to_ptr.vmem [resolvable:$true] %s283_s27 }
  0x13   : > { %s1571_s29 = smov [#allocation6]   ;;  %s1442_s18 = scalar_lea.hbm %s1890_s1, 1536 }
  0x14   : > { %s1913_s25 = scalar_select %p1685_p10, 1, 0 }
  0x15   : > { %p1336_p11 = pneg %p1685_p10  ;;  %s302_s30 = sshll.u32 %s1571_s29, 4  ;;  %s1697_s30 = int_to_ptr.vmem [resolvable:$true] %s302_s30 }
  0x16   : > { %p1443_p13 = scmp.ne.s32.totalorder %s1890_s1, %s1442_s18  ;;  %p1449_p3 = scmp.lt.u32.totalorder %s1442_s18, %s1890_s1 }
  0x17   : > { %p1693_p12 = pnand %p1900_p9, %p1336_p11 }
  0x19   : > { %p1444_p0 = pneg %p1693_p12 }
  0x1b   : > { %p1445_p1 = pnand %p1444_p0, %p1443_p13 }
  0x1d   : > { %p1446_p2 = pneg %p1445_p1 }
  0x1f   : > { %p1451_p4 = pnand %p1449_p3, %p1446_p2 }
  0x21   : > { %1454 = shalt.err (!%p1451_p4)
}
  0x22   : > { %s1455_s29 = scalar_lea.vmem %s284_s27, 1536  ;;  %p1463_p9 = scmp.lt.s32.totalorder %s284_s27, %s284_s27 }
  0x23   : > { %p1456_p7 = scmp.ne.s32.totalorder %s284_s27, %s1455_s29  ;;  %p1464_p6 = scmp.lt.s32.totalorder %s1455_s29, %s1455_s29 }
  0x25   : > { %p1458_p8 = pnand %p1456_p7, %p1444_p0  ;;  %p1465_p5 = por %p1464_p6, %p1463_p9 }
  0x27   : > { %p1459_p11 = pneg %p1458_p8 }
  0x29   : > { %p1466_p10 = pnand %p1465_p5, %p1459_p11 }
  0x2b   : > { %1469 = shalt.err (!%p1466_p10)
}
  0x2c   : > { %s1572_s11 = smov 64   ;;  %s1573_s12 = smov 4  }
  0x2d   : > { %1339 = dma.hbm_to_vmem [thread:$0]  (!%p1693_p12), %s1890_s1, 1536, %s284_s27, [#allocation4], %s1572_s11, %s1572_s11, %s1573_s12  }
  0x2e   : > { %s1470_s26 = scalar_lea.hbm %s1893_s4, 3072 }
  0x2f   : > { %p1471_p13 = scmp.ne.s32.totalorder %s1893_s4, %s1470_s26  ;;  %p1477_p9 = scmp.lt.u32.totalorder %s1470_s26, %s1893_s4 }
  0x31   : > { %p1473_p5 = pnand %p1471_p13, %p1444_p0 }
  0x33   : > { %p1474_p6 = pneg %p1473_p5 }
  0x35   : > { %p1479_p10 = pnand %p1477_p9, %p1474_p6 }
  0x37   : > { %1482 = shalt.err (!%p1479_p10)
}
  0x38   : > { %s1483_s27 = scalar_lea.vmem %s1697_s30, 3072  ;;  %p1491_p4 = scmp.lt.s32.totalorder %s1697_s30, %s1697_s30 }
  0x39   : > { %p1484_p1 = scmp.ne.s32.totalorder %s1697_s30, %s1483_s27  ;;  %p1492_p7 = scmp.lt.s32.totalorder %s1483_s27, %s1483_s27 }
  0x3b   : > { %p1486_p2 = pnand %p1484_p1, %p1444_p0  ;;  %p1493_p8 = por %p1492_p7, %p1491_p4 }
  0x3d   : > { %p1487_p3 = pneg %p1486_p2 }
  0x3f   : > { %p1494_p11 = pnand %p1493_p8, %p1487_p3 }
  0x41   : > { %1497 = shalt.err (!%p1494_p11)
}
  0x42   : > { %1342 = dma.hbm_to_vmem [thread:$0]  (!%p1693_p12), %s1893_s4, 3072, %s1697_s30, [#allocation7], %s1572_s11, %s1572_s11, %s1573_s12  }
  0x43   : > { %p1915_p13 = scmp.ne.s32.totalorder %s1913_s25, 0 }
  0x44   : > { %p1916_p5 = scmp.eq.s32.totalorder (!%p1915_p13), %s1657_s17, 0 }
  0x45   : > { %341 = sbr.rel (%p1915_p13) target bundleno = 732 (0x2dc), region = 60 }
  0x4c   : > { %1543 = dma.done.wait (%p1916_p5), [#allocation4], 1536   ;;  %p1917_p0 = pmov %p1916_p5 }
  0x4e   : > { %1545 = vsyncadd (%p1917_p0), [#allocation4], 4294965760  ;;  %p1918_p6 = pmov %p1917_p0 }
  0x4f   : > { %p1919_p9 = pmov %p1917_p0 }
  0x50   : > { %1547 = dma.done.wait (%p1918_p6), [#allocation7], 3072  }
  0x51   : > { %1549 = vsyncadd (%p1919_p9), [#allocation7], 4294964224  ;;  %p383_p10 = scmp.lt.s32.totalorder %s1657_s17, 1  ;;  %v1574_v0 = vmov 0   ;;  %v1398_v8 = vld [vmem:[#allocation3] sm:$0xff]   ;;  %v1399_v11 = vld [vmem:[#allocation3 + $0x8] sm:$0xff]  }
  0x52   : > { %526 = vmatprep.subr.bf16.mxu0 %v1574_v0  ;;  %vm401_vm0 = vsmask.f32 7424  ;;  %s1575_s12 = smov 64   ;;  %v1400_v14 = vld [vmem:[#allocation3 + $0x10] sm:$0xff]   ;;  %v1401_v15 = vld [vmem:[#allocation3 + $0x18] sm:$0xff]   ;;  %vm419_vm1 = vcmask 1046528  }
  0x53   : > { %s384_s24 = scalar_select %p383_p10, %s1657_s17, 1  ;;  %527 = vmatpush1.bf16.msra.mxu0 %v1398_v8  ;;  %v1402_v17 = vld [vmem:[#allocation3 + $0x20] sm:$0xff]   ;;  %vm423_vm2 = vcmask 523264   ;;  %v1403_v21 = vld [vmem:[#allocation3 + $0x28] sm:$0xff]   ;;  %v1404_v23 = vld [vmem:[#allocation3 + $0x30] sm:$0xff]   ;;  %vm587_vm3 = vcmask 1040384  }
  0x54   : > { %528 = vmatprep.subr.bf16.mxu0 %v1574_v0  ;;  %v1405_v24 = vld [vmem:[#allocation3 + $0x38] sm:$0xff]   ;;  %v1406_v25 = vld [vmem:[#allocation3 + $0x40] sm:$0xff]   ;;  %v1407_v26 = vld [vmem:[#allocation3 + $0x48] sm:$0xff]   ;;  %vm588_vm4 = vsmask.f32 256  ;;  %v1576_v52 = vmov 0.0  }
  0x55   : > { %s1325_s25 = smul.u32 12, %s384_s24  ;;  %v1408_v27 = vld [vmem:[#allocation3 + $0x50] sm:$0xff]   ;;  %v1409_v28 = vld [vmem:[#allocation3 + $0x58] sm:$0xff]   ;;  %v1411_v31 = vld [vmem:[#allocation6 + $0x40] sm:$0xff]   ;;  %vm593_vm6 = vsmask.f32 7938 }
  0x56   : > { %v1412_v32 = vld [vmem:[#allocation6] sm:$0xff]   ;;  %1257 = vmatprep.subr.bf16.mxu1 %v1411_v31  ;;  %vm1772_vm5 = vmand %vm587_vm3, %vm588_vm4  ;;  %v590_v34 = vld [vmem:[#allocation2] sm:$0x1]  ;;  %vm1577_vm8 = vmmov 0   ;;  %vm626_vm9 = vcmask 1043456   ;;  %s1256_s15 = sshll.u32 %s1657_s17, 8 }
  0x57   : > { %s1761_s11 = scalar_lea.vmem %s1889_s0, %s1325_s25  ;;  %529 = vmatpush1.bf16.msra.mxu0 %v1399_v11  ;;  %1258 = vmatpush3.bf16.msra.mxu1 %v1412_v32  ;;  %v595_v35 = vld [vmem:[#allocation2 + $0x8] sm:$0x1]  ;;  %v591_v36 = vsel %vm1772_vm5, 0, %v590_v34  ;;  %vm594_vm7 = vmand %vm587_vm3, %vm593_vm6  ;;  %v1413_v37 = vld [vmem:[#allocation6 + $0x48] sm:$0xff]   ;;  %vm604_vm10 = vsmask.f32 4368  ;;  %s1842_s30 = scalar_lea.hbm %s1899_s10, %s1256_s15 }
  0x58   : > { %v389_v1 = vld [vmem:[%s1761_s11] sm:$0xf]  ;;  %v390_v2 = vld [vmem:[%s1761_s11 + $0x4] sm:$0xf]  ;;  %530 = vmatprep.subr.bf16.mxu0 %v1574_v0  ;;  %v1414_v38 = vld [vmem:[#allocation6 + $0x8] sm:$0xff]   ;;  %v596_v39 = vsel %vm594_vm7, 0, %v595_v35  ;;  %1259 = vmatprep.subr.bf16.mxu1 %v1413_v37 }
  0x59   : > { %v1191_v3 = vcombine.low %v389_v1, %v390_v2  ;;  %v1395_v4 = vld [vmem:[%s1761_s11 + $0x8] ss:$0 sps:$4 sm:$0x11]   ;;  %v392_v18 = vld [vmem:[%s1761_s11] sm:$0xe]  ;;  %v1415_v40 = vld [vmem:[#allocation6 + $0x50] sm:$0xff]  }
  0x5a   : > { %v410_v7 = vshll.u32 %v1395_v4, 16  ;;  %v421_v16 = vrot.slane %v1395_v4, 1  ;;  %v1193_v19 = vcombine.low %v392_v18, %v390_v2  ;;  %592 = vst [vmem:[#allocation2] sm:$0x1] %v591_v36  ;;  %597 = vst [vmem:[#allocation2 + $0x8] sm:$0x1] %v596_v39 }
  0x5b   : > { %v403_v5 = vshrl.u32 %v1191_v3, 16  ;;  %v405_v6 = vshll.u32 %v1191_v3, 16  ;;  %531 = vmatpush1.bf16.msra.mxu0 %v1400_v14  ;;  %1260 = vmatpush3.bf16.msra.mxu1 %v1414_v38  ;;  %v1416_v41 = vld [vmem:[#allocation6 + $0x10] sm:$0xff]   ;;  %v1417_v42 = vld [vmem:[#allocation6 + $0x58] sm:$0xff]   ;;  %v1419_v44 = vld [vmem:[#allocation6 + $0x60] sm:$0xff]   ;;  %p1922_p1 = scmp.ne.s32.totalorder %s1910_s23, 0 }
  0x5c   : > { %v412_v10 = vrot.slane %v410_v7, 1  ;;  %532 = vmatprep.subr.bf16.mxu0 %v1574_v0  ;;  %v420_v20 = vrot.slane %v1193_v19, 1  ;;  %1261 = vmatprep.subr.bf16.mxu1 %v1415_v40  ;;  %v1418_v43 = vld [vmem:[#allocation6 + $0x18] sm:$0xff]   ;;  %v1420_v45 = vld [vmem:[#allocation6 + $0x20] sm:$0xff]   ;;  %v1421_v46 = vld [vmem:[#allocation6 + $0x68] sm:$0xff]   ;;  %s1578_s22 = smov [#allocation8]  }
  0x5d   : > { %v407_v9 = vrot.slane %v405_v6, 1  ;;  %v1422_v47 = vld [vmem:[#allocation6 + $0x28] sm:$0xff]   ;;  %v1423_v48 = vld [vmem:[#allocation6 + $0x70] sm:$0xff]   ;;  %v1425_v50 = vld [vmem:[#allocation6 + $0x78] sm:$0xff]   ;;  %s1502_s18 = sshll.u32 %s1578_s22, 4  ;;  %s1503_s18 = int_to_ptr.vmem [resolvable:$false] %s1502_s18 }
  0x5e   : > { %v422_v22 = vsel %vm419_vm1, %v420_v20, %v421_v16  ;;  %v1424_v49 = vld [vmem:[#allocation6 + $0x30] sm:$0xff]   ;;  %v1426_v51 = vld [vmem:[#allocation6 + $0x38] sm:$0xff]   ;;  %v1397_v55 = vld [vmem:[%s1761_s11 + $0x8] ss:$0 sps:$4 sm:$0x11]   ;;  %s1504_s20 = scalar_lea.vmem %s1503_s18, 512 }
  0x5f   : > { %v408_v12 = vor.u32 %v407_v9, %v403_v5  ;;  %533 = vmatpush1.bf16.msra.mxu0 %v1401_v15  ;;  %1206 = vmatprep.mubr.msk.bf16.mxu0 %vm423_vm2, %v422_v22  ;;  %v1396_v53 = vld [vmem:[%s1761_s11] sm:$0xff]   ;;  %v1435_v57 = vld [vmem:[%s1896_s7 + $0x8] sm:$0xff]   ;;  %v987_v60 = vshll.u32 %v1397_v55, 16  ;;  %v1437_v61 = vld [vmem:[%s1896_s7 + $0x10] sm:$0xff]  }
  0x60   : > { %534 = vmatprep.subr.bf16.mxu0 %v1574_v0  ;;  %1262 = vmatpush3.bf16.msra.mxu1 %v1416_v41  ;;  %v1433_v54 = vld [vmem:[%s1896_s7] sm:$0xff]   ;;  %v982_v56 = vshll.u32 %v1396_v53, 16  ;;  %v980_v58 = vshrl.u32 %v1396_v53, 16  ;;  %vm627_vm11 = vmand %vm626_vm9, %vm593_vm6  ;;  %v1430_v33 = vld [vmem:[#allocation6 + $0x88] sm:$0xff]  }
  0x61   : > { %v413_v13 = vsel %vm401_vm0, %v408_v12, %v412_v10  ;;  %1263 = vmatprep.subr.bf16.mxu1 %v1417_v42  ;;  %v989_v63 = vrot.slane %v987_v60, 1  ;;  %v1207_v2 = vld [vmem:[%s1891_s2] ss:$0 sm:$0xff]  ;;  %v628_v20 = vld [vmem:[#allocation2] sm:$0xf]  ;;  %vm605_vm12 = vmor %vm588_vm4, %vm604_vm10 }
  0x62   : > { %414 = vrot.lane.b32.xlu0 %v413_v13, %s1575_s12  ;;  %v984_v59 = vrot.slane %v982_v56, 1  ;;  %v1208_v4 = vld [vmem:[%s1892_s3] ss:$0 sm:$0xff]  ;;  %v1429_v42 = vld [vmem:[#allocation6 + $0x80] sm:$0xff]   ;;  %s380_s12 = sand.u32 1, %s1560_s14  }
  0x63   : > { %535 = vmatpush1.bf16.msra.mxu0 %v1402_v17  ;;  %s1189_s26 = sshll.u32 %s380_s12, 4  ;;  %s1848_s11 = scalar_lea.sflag [#allocation5], %s380_s12 }
  0x64   : > { %536 = vmatprep.subr.bf16.mxu0 %v1574_v0  ;;  %1264 = vmatpush3.bf16.msra.mxu1 %v1418_v43  ;;  %v985_v62 = vor.u32 %v984_v59, %v980_v58  ;;  %s382_s19 = scalar_lea.vmem [#allocation8], %s1189_s26 }
  0x65   : > { %1265 = vmatprep.subr.bf16.mxu1 %v1419_v44  ;;  %v1431_v44 = vld [vmem:[#allocation6 + $0x90] sm:$0xff]   ;;  %s1097_s24 = sshll.u32 %s382_s19, 4  ;;  %s1844_s24 = int_to_ptr.vmem [resolvable:$true] %s1097_s24 }
  0x66   : > { %v990_v1 = vsel %vm401_vm0, %v985_v62, %v989_v63  ;;  %s1498_s17 = scalar_lea.vmem %s1844_s24, 256  ;;  %p1505_p4 = scmp.lt.s32.totalorder %s1844_s24, %s1503_s18 }
  0x67   : > { %537 = vmatpush1.bf16.msra.mxu0 %v1403_v21  ;;  %p1499_p12 = scmp.ne.s32.totalorder %s1844_s24, %s1498_s17  ;;  %p1506_p7 = scmp.lt.s32.totalorder %s1504_s20, %s1498_s17 }
  0x68   : > { %538 = vmatprep.subr.bf16.mxu0 %v1574_v0  ;;  %1266 = vmatpush3.bf16.msra.mxu1 %v1420_v45  ;;  %v1432_v45 = vld [vmem:[#allocation6 + $0x98] sm:$0xff]  }
  0x69   : > { %1267 = vmatprep.subr.bf16.mxu1 %v1421_v46  ;;  %v1434_v46 = vld [vmem:[#allocation6 + $0xa0] sm:$0xff]   ;;  %p1500_p2 = pnand %p1499_p12, %p1922_p1  ;;  %p1507_p8 = por %p1506_p7, %p1505_p4 }
  0x6b   : > { %539 = vmatpush1.bf16.msra.mxu0 %v1404_v23  ;;  %p1501_p3 = pneg %p1500_p2 }
  0x6c   : > { %540 = vmatprep.subr.bf16.mxu0 %v1574_v0  ;;  %1268 = vmatpush3.bf16.msra.mxu1 %v1422_v47  ;;  %v1436_v47 = vld [vmem:[#allocation6 + $0xa8] sm:$0xff]  }
  0x6d   : > { %1269 = vmatprep.subr.bf16.mxu1 %v1423_v48  ;;  %v1438_v48 = vld [vmem:[#allocation6 + $0xb0] sm:$0xff]   ;;  %p1508_p11 = pnand %p1507_p8, %p1501_p3 }
  0x6f   : > { %541 = vmatpush1.bf16.msra.mxu0 %v1405_v24  ;;  %v632_v24 = vld [vmem:[#allocation2 + $0x8] sm:$0x1] }
  0x70   : > { %542 = vmatprep.subr.bf16.mxu0 %v1574_v0  ;;  %1270 = vmatpush3.bf16.msra.mxu1 %v1424_v49 }
  0x71   : > { %1271 = vmatprep.subr.bf16.mxu1 %v1425_v50 }
  0x73   : > { %543 = vmatpush1.bf16.msra.mxu0 %v1406_v25 }
  0x74   : > { %544 = vmatprep.subr.bf16.mxu0 %v1574_v0  ;;  %1272 = vmatpush3.bf16.msra.mxu1 %v1426_v51  ;;  %v1440_v51 = vld [vmem:[#allocation6 + $0xb8] sm:$0xff]  }
  0x75   : > { %1293 = vmatprep.subr.bf16.mxu1 %v1576_v52 }
  0x77   : > { %545 = vmatpush1.bf16.msra.mxu0 %v1407_v26 }
  0x78   : > { %546 = vmatprep.subr.bf16.mxu0 %v1574_v0 }
  0x7b   : > { %547 = vmatpush1.bf16.msra.mxu0 %v1408_v27 }
  0x7c   : > { %548 = vmatprep.subr.bf16.mxu0 %v1574_v0  ;;  %v1439_v0 = vld [vmem:[%s1896_s7 + $0x18] sm:$0xff]  }
  0x7f   : > { %549 = vmatpush1.bf16.msra.mxu0 %v1409_v28 }
  0x80   : > { %1313 = vmatprep.subr.bf16.mxu0 %v1576_v52 }
  0xd4   : > { %v415_v29 = vpop.permute.xlu0 %414 }
  0xd5   : > { %v425_v30 = vsel %vm423_vm2, %v1191_v3, %v415_v29 }
  0xd6   : > { %559 = vmatmul.mubr.bf16.vlgmr.msra.gmra.mrb[0].mxu0 %v425_v30 }
  0xd7   : > { %1314 = vmatpush3.bf16.msra.mxu0 %v1433_v54  ;;  %1321 = vmatprep.mubr.msk.bf16.mxu0 %vm1577_vm8, %v1576_v52 }
  0xd8   : > { %1315 = vmatprep.subr.bf16.mxu0 %v1576_v52 }
  0xdb   : > { %1316 = vmatpush3.bf16.msra.mxu0 %v1435_v57 }
  0xdc   : > { %1317 = vmatprep.subr.bf16.mxu0 %v1576_v52 }
  0xdf   : > { %1318 = vmatpush3.bf16.msra.mxu0 %v1437_v61 }
  0xe0   : > { %1319 = vmatprep.subr.bf16.mxu0 %v1576_v52 }
  0xe3   : > { %1320 = vmatpush3.bf16.msra.mxu0 %v1439_v0 }
  0xe6   : > { %1322 = vmatmul.mubr.msk.bf16.vlgmr.msra.gmra.mrb[4].mxu0 %vm423_vm2, %v990_v1 }
 0x1a9   : > { %v560_v3 = vpop.f32.mrb[0].mxu0 }
 0x1aa   : > { %v574_v5 = vmul.f32 %v1207_v2, %v560_v3  ;;  %v562_v6 = vpop.f32.mrb[1].mxu0  ;;  %v1248_v3 = vld [vmem:[%s1898_s9] ss:$0 sm:$0xff] }
 0x1ab   : > { %v563_v7 = vpop.f32.mrb[2].mxu0 }
 0x1ac   : > { %v583_v8 = vadd.f32 %v1208_v4, %v574_v5  ;;  %v575_v9 = vmul.f32 %v1207_v2, %v563_v7  ;;  %v565_v10 = vpop.f32.mrb[3].mxu0  ;;  %v1238_v5 = vld [vmem:[%s1894_s5] ss:$0 sm:$0xff] }
 0x1ae   : > { %v585_v11 = vmax.f32 %v583_v8, 0.0  ;;  %v584_v12 = vadd.f32 %v1208_v4, %v575_v9  ;;  %v1239_v8 = vld [vmem:[%s1895_s6] ss:$0 sm:$0xff] }
 0x1b0   : > { %v1254_v13 = vpack.c.bf16 %v585_v11, %v585_v11  ;;  %v586_v14 = vmax.f32 %v584_v12, 0.0 }
 0x1b2   : > { %v607_v15 = vshrl.u32 %v1254_v13, 16  ;;  %v1255_v16 = vpack.c.bf16 %v586_v14, %v586_v14  ;;  %v610_v18 = vshll.u32 %v1254_v13, 16 }
 0x1b4   : > { %v609_v17 = vrot.slane %v607_v15, 7  ;;  %v615_v19 = vshrl.u32 %v1255_v16, 16  ;;  %v618_v23 = vshll.u32 %v1255_v16, 16 }
 0x1b6   : > { %v612_v21 = vor.u32 %v610_v18, %v609_v17  ;;  %v617_v22 = vrot.slane %v615_v19, 7  ;;  %v613_v25 = vrot.slane %v609_v17, 4 }
 0x1b8   : > { %v629_v26 = vsel %vm627_vm11, %v612_v21, %v628_v20  ;;  %v620_v27 = vor.u32 %v618_v23, %v617_v22  ;;  %v622_v28 = vrot.slane %v617_v22, 4 }
 0x1b9   : > { %630 = vst [vmem:[#allocation2] sm:$0xf] %v629_v26  ;;  %v1052_v56 = vpop.f32.mrb[4].mxu0 }
 0x1ba   : > { %v621_v29 = vsel %vm605_vm12, %v613_v25, %v620_v27  ;;  %v633_v30 = vsel %vm1772_vm5, %v622_v28, %v632_v24  ;;  %v1323_v57 = vpop.f32.mrb[5].mxu0 }
 0x1bb   : > { %631 = vst [vmem:[#allocation2 + $0x4] sm:$0xf] %v621_v29  ;;  %634 = vst [vmem:[#allocation2 + $0x8] sm:$0x1] %v633_v30  ;;  %v1055_v58 = vpop.f32.mrb[6].mxu0 }
 0x1bc   : > { %v1324_v59 = vpop.f32.mrb[7].mxu0 }
 0x1c0   : > { %v635_v31 = vld [vmem:[#allocation2] sm:$0xf] }
 0x1c1   : > { %v638_v49 = vld [vmem:[#allocation2] sm:$0xe] }
 0x1c2   : > { %v636_v32 = vld [vmem:[#allocation2 + $0x4] sm:$0xf]  ;;  %v1428_v35 = vld [vmem:[#allocation2 + $0x8] ss:$0 sps:$4 sm:$0x11]  }
 0x1c3   : > { %v1211_v34 = vcombine.low %v635_v31, %v636_v32  ;;  %v656_v37 = vshll.u32 %v1428_v35, 16  ;;  %v1213_v50 = vcombine.low %v638_v49, %v636_v32  ;;  %v665_v54 = vrot.slane %v1428_v35, 1 }
 0x1c5   : > { %v651_v36 = vshll.u32 %v1211_v34, 16  ;;  %v649_v38 = vshrl.u32 %v1211_v34, 16  ;;  %v658_v41 = vrot.slane %v656_v37, 1  ;;  %v664_v53 = vrot.slane %v1213_v50, 1 }
 0x1c7   : > { %v653_v39 = vrot.slane %v651_v36, 1  ;;  %v666_v55 = vsel %vm419_vm1, %v664_v53, %v665_v54 }
 0x1c9   : > { %v654_v40 = vor.u32 %v653_v39, %v649_v38 }
 0x1cb   : > { %v659_v43 = vsel %vm401_vm0, %v654_v40, %v658_v41 }
 0x1cc   : > { %892 = vmatprep.mubr.bf16.mxu1 %v659_v43 }
 0x1cd   : > { %893 = vmatmul.mubr.bf16.vlgmr.msra.gmra.mrb[0].mxu1 %v1211_v34 }
 0x1ce   : > { %1294 = vmatpush3.bf16.msra.mxu1 %v1429_v42  ;;  %1309 = vmatprep.mubr.msk.bf16.mxu1 %vm1577_vm8, %v1576_v52 }
 0x1cf   : > { %1295 = vmatprep.subr.bf16.mxu1 %v1576_v52 }
 0x1d2   : > { %1296 = vmatpush3.bf16.msra.mxu1 %v1430_v33 }
 0x1d3   : > { %1297 = vmatprep.subr.bf16.mxu1 %v1576_v52 }
 0x1d6   : > { %1298 = vmatpush3.bf16.msra.mxu1 %v1431_v44 }
 0x1d7   : > { %1299 = vmatprep.subr.bf16.mxu1 %v1576_v52 }
 0x1da   : > { %1300 = vmatpush3.bf16.msra.mxu1 %v1432_v45 }
 0x1db   : > { %1301 = vmatprep.subr.bf16.mxu1 %v1576_v52 }
 0x1de   : > { %1302 = vmatpush3.bf16.msra.mxu1 %v1434_v46 }
 0x1df   : > { %1303 = vmatprep.subr.bf16.mxu1 %v1576_v52 }
 0x1e2   : > { %1304 = vmatpush3.bf16.msra.mxu1 %v1436_v47 }
 0x1e3   : > { %1305 = vmatprep.subr.bf16.mxu1 %v1576_v52 }
 0x1e6   : > { %1306 = vmatpush3.bf16.msra.mxu1 %v1438_v48 }
 0x1e7   : > { %1307 = vmatprep.subr.bf16.mxu1 %v1576_v52  ;;  %v1247_v52 = vld [vmem:[%s1897_s8] ss:$0 sm:$0xff] }
 0x1e8   : > { %v1066_v2 = vmul.f32 %v1247_v52, %v1052_v56  ;;  %v1067_v12 = vmul.f32 %v1247_v52, %v1055_v58 }
 0x1ea   : > { %1308 = vmatpush3.bf16.msra.mxu1 %v1440_v51  ;;  %v1075_v10 = vadd.f32 %v1248_v3, %v1066_v2  ;;  %v1076_v18 = vadd.f32 %v1248_v3, %v1067_v12 }
 0x1ed   : > { %1310 = vmatmul.mubr.bf16.vlgmr.msra.gmra.mrb[4].mxu1 %v666_v55 }
 0x2a0   : > { %v1273_v60 = vpop.f32.mrb[0].mxu1 }
 0x2a1   : > { %v1274_v61 = vpop.f32.mrb[1].mxu1 }
 0x2a2   : > { %v1275_v62 = vadd.f32 %v1274_v61, %v1273_v60  ;;  %v1276_v63 = vpop.f32.mrb[2].mxu1 }
 0x2a3   : > { %v1277_v0 = vpop.f32.mrb[3].mxu1 }
 0x2a4   : > { %v1278_v1 = vadd.f32 %v1277_v0, %v1276_v63 }
 0x2c0   : > { %v935_v4 = vpop.f32.mrb[4].mxu1 }
 0x2c1   : > { %v936_v6 = vadd.f32 %v1275_v62, %v935_v4  ;;  %v1311_v7 = vpop.f32.mrb[5].mxu1 }
 0x2c2   : > { %v938_v9 = vpop.f32.mrb[6].mxu1 }
 0x2c3   : > { %v949_v11 = vmul.f32 %v1238_v5, %v936_v6  ;;  %v939_v13 = vadd.f32 %v1278_v1, %v938_v9  ;;  %v1312_v14 = vpop.f32.mrb[7].mxu1 }
 0x2c5   : > { %v958_v15 = vadd.f32 %v1239_v8, %v949_v11  ;;  %v950_v16 = vmul.f32 %v1238_v5, %v939_v13 }
 0x2c7   : > { %v1077_v17 = vadd.f32 %v1075_v10, %v958_v15  ;;  %v959_v19 = vadd.f32 %v1239_v8, %v950_v16 }
 0x2c9   : > { %v1079_v20 = vmax.f32 %v1077_v17, 0.0  ;;  %v1078_v21 = vadd.f32 %v1076_v18, %v959_v19 }
 0x2cb   : > { %1081 = vst [vmem:[%s382_s19] sm:$0xff] %v1079_v20  ;;  %v1080_v22 = vmax.f32 %v1078_v21, 0.0 }
 0x2cd   : > { %1082 = vst [vmem:[%s382_s19 + $0x8] sm:$0xff] %v1080_v22 }
 0x2ce   : > { %1511 = shalt.err (!%p1508_p11)
}
 0x2cf   : > { %s1512_s12 = scalar_lea.hbm %s1842_s30, 256  ;;  %s1516_s29 = scalar_lea.hbm %s1899_s10, 512 }
 0x2d0   : > { %p1513_p13 = scmp.ne.s32.totalorder %s1842_s30, %s1512_s12  ;;  %p1517_p6 = scmp.lt.u32.totalorder %s1842_s30, %s1899_s10 }
 0x2d1   : > { %p1518_p9 = scmp.lt.u32.totalorder %s1516_s29, %s1512_s12  ;;  %p1520_p12 = scmp.lt.u32.totalorder %s1512_s12, %s1842_s30 }
 0x2d2   : > { %p1514_p5 = pnand %p1513_p13, %p1922_p1 }
 0x2d3   : > { %p1519_p10 = por %p1518_p9, %p1517_p6 }
 0x2d4   : > { %p1515_p0 = pneg %p1514_p5 }
 0x2d5   : > { %p1521_p2 = por %p1520_p12, %p1519_p10 }
 0x2d7   : > { %p1522_p3 = pnand %p1521_p2, %p1515_p0 }
 0x2d9   : > { %1525 = shalt.err (!%p1522_p3)
}
 0x2da   : > { %s1579_s19 = smov 128   ;;  %s1580_s25 = smov 8  }
 0x2db   : > { %1334 = dma.vmem_to_hbm [thread:$0]  (%p1922_p1), %s1844_s24, 256, %s1842_s30, %s1848_s11, %s1579_s19, %s1579_s19, %s1580_s25  }
 0x2dc PF: > { %s1923_s28 = sld [smem:[#allocation15_spill]]  ;;  %p1351_p4 = scmp.ge.s32.totalorder %s1568_s16, 2 }
 0x2dd   : > { %s1112_s17 = sand.u32 1, %s1556_s13  }
 0x2de   : > { %s1113_s22 = scalar_lea.sflag [#allocation5], %s1112_s17 }
 0x2e2   : > { %p1924_p7 = scmp.ne.s32.totalorder %s1923_s28, 0 }
 0x2e4   : > { %p1344_p8 = pnand %p1351_p4, %p1924_p7 }
 0x2e6   : > { %1551 = dma.done.wait (!%p1344_p8), %s1113_s22, 256  }
 0x2e7   : > { %1553 = vsyncadd (!%p1344_p8), %s1113_s22, 4294967040  ;;  %s1925_s16 = sld [smem:[#allocation13_spill]]  ;;  %s1926_s18 = sld [smem:[#allocation12_spill]] }
 0x2e8   : > { %s1927_s15 = sld [smem:[#allocation14_spill]]  ;;  %s1928_s13 = smov %s1560_s14 }
 0x2ed   : > { %p22_p11 = scmp.ge.s32.totalorder %s1925_s16, 4   ;;  %s1929_s14 = smov %s1926_s18 }
 0x2ef   :  { %24 = sbr.rel (!%p22_p11) target bundleno = 5 (0x5), region = 104 }
 0x2f6   :  { %1118 = vsyncpa [#allocation4], 1 }
 0x2f7   :  { %1120 = vsyncpa [#allocation4 + $0x1], 1 }
 0x2f8   :  { %1121 = vsyncpa [#allocation7], 1 }
 0x2f9   :  { %1122 = vsyncpa [#allocation5], 1 }
 0x2fa   :  { %1124 = vsyncpa [#allocation5 + $0x1], 1 }

</bundles_post_ra>
